<compile_context>
chip_gen: v7x
topology: tpu7x:2x2x1
jax: 0.10.0
libtpu: 0.0.40
codegen_flags: <defaults>
</compile_context>

<pallas_src>
from functools import partial

import jax
import jax.numpy as jnp
from jax.experimental import pallas as pl
from jax.experimental.pallas import tpu as pltpu

HEADS = 4
EPS = 1e-5
NEG_SLOPE = 0.2
NEG_INF = -1e30
# Explicit VMEM budget (review): v5e default scoped limit is only 16 MiB,
# v7x physical is 64 MiB/TC -> keep resident XW + double-buffered adj panel
# well under this and re-derive when N / TM grow.
VMEM_LIMIT_BYTES = 48 * 1024 * 1024

_VM = pl.BlockSpec(memory_space=pltpu.MemorySpace.VMEM)


# ---------------------------------------------------------------------------
# Kernels
# ---------------------------------------------------------------------------
def _xw_attn_tail(h, w_ref, asrc_ref, adst_ref,
                  xw_out_ref, asrcT_out_ref, adst_out_ref, dh):
    """Hoisted per-layer pre-pass tail: XW (per-head layout), a_src^T, a_dst."""
    xw = jnp.dot(h, w_ref[...], preferred_element_type=jnp.float32)        # [N, H*dh]
    a_s = jnp.dot(xw, asrc_ref[...], preferred_element_type=jnp.float32)   # [N, H]
    a_d = jnp.dot(xw, adst_ref[...], preferred_element_type=jnp.float32)   # [N, H]
    adst_out_ref[...] = a_d
    for hd in range(HEADS):
        # one-time lane relayouts (per layer, NOT per destination block)
        asrcT_out_ref[hd:hd + 1, :] = jnp.transpose(a_s[:, hd:hd + 1])     # [1, N]
        xw_out_ref[hd] = xw[:, hd * dh:(hd + 1) * dh]                      # [N, dh]


def pre_gat_kernel(x_ref, w_ref, asrc_ref, adst_ref,
                   xw_out_ref, asrcT_out_ref, adst_out_ref, *, dh):
    """Layer-1 pre-pass: XW1 / a_src^T / a_dst from the raw node features."""
    _xw_attn_tail(x_ref[...], w_ref, asrc_ref, adst_ref,
                  xw_out_ref, asrcT_out_ref, adst_out_ref, dh)


def gat_kernel(xw_ref, asrcT_ref, adst_ref, adj_ref, out_ref):
    """One destination-row block of a GATConv layer (weights already hoisted).

    xw_ref    : [HEADS, N, dh]   per-head transformed source features (resident)
    asrcT_ref : [HEADS, N]       source attention terms (resident)
    adst_ref  : [TM, HEADS]      destination attention terms (blocked)
    adj_ref   : [TM, N]  bf16    adjacency row panel (adj[i, j]=1 iff edge j->i)
    out_ref   : [TM, HEADS*dh]   per-head outputs, lane-dense (mean taken later)
    """
    # edge mask computed once per block, reused by every head
    neg = jnp.where(adj_ref[...] > 0, 0.0, NEG_INF).astype(jnp.float32)     # [TM, N]

    parts = []
    for hd in range(HEADS):
        e = adst_ref[:, hd:hd + 1] + asrcT_ref[hd:hd + 1, :]                # [TM, N]
        e = jnp.where(e > 0, e, NEG_SLOPE * e)                              # LeakyReLU(0.2)
        e = e + neg                                                         # mask non-edges
        e = e - jnp.max(e, axis=1, keepdims=True)
        p = jnp.exp(e)                                                      # masked -> 0
        # softmax denom reciprocal on the EUP (approx), off the VALU slots
        alpha = p * pl.reciprocal(jnp.sum(p, axis=1, keepdims=True), approx=True)
        parts.append(jnp.dot(alpha, xw_ref[hd],
                             preferred_element_type=jnp.float32))           # [TM, dh]

    # lane-dense 128-lane output store (head mean folded into the next pass)
    out_ref[...] = jnp.concatenate(parts, axis=1)


def bn_gat_kernel(y_ref, meanm_ref, b_ref, g_ref, be_ref,
                  w_ref, asrc_ref, adst_ref,
                  xw_out_ref, asrcT_out_ref, adst_out_ref, *, dh):
    """Head-mean + bias + BatchNorm1d (batch stats) + ReLU, fused with the
    NEXT GAT layer's hoisted pre-pass (XW / a_src^T / a_dst)."""
    h = jnp.dot(y_ref[...], meanm_ref[...],
                preferred_element_type=jnp.float32) + b_ref[...]            # [N, dh]
    mu = jnp.mean(h, axis=0, keepdims=True)
    var = jnp.mean((h - mu) ** 2, axis=0, keepdims=True)
    h = jnp.maximum((h - mu) * jax.lax.rsqrt(var + EPS) * g_ref[...] + be_ref[...], 0.0)
    _xw_attn_tail(h, w_ref, asrc_ref, adst_ref,
                  xw_out_ref, asrcT_out_ref, adst_out_ref, dh)


def bn_gcn_kernel(y_ref, meanm_ref, b_ref, g_ref, be_ref, wg_ref, hw_out_ref):
    """Head-mean + bias + BatchNorm1d + ReLU, fused with the GCN's HW = h @ Wg."""
    h = jnp.dot(y_ref[...], meanm_ref[...],
                preferred_element_type=jnp.float32) + b_ref[...]            # [N, dh]
    mu = jnp.mean(h, axis=0, keepdims=True)
    var = jnp.mean((h - mu) ** 2, axis=0, keepdims=True)
    h = jnp.maximum((h - mu) * jax.lax.rsqrt(var + EPS) * g_ref[...] + be_ref[...], 0.0)
    hw_out_ref[...] = jnp.dot(h, wg_ref[...], preferred_element_type=jnp.float32)


def gcn_kernel(hw_ref, adj_ref, dsrc_ref, ddst_ref, bg_ref, out_ref):
    """One destination-row block of GCNConv + ReLU (HW and degrees precomputed).

    hw_ref   : [N, dh]   H @ Wg (resident)
    adj_ref  : [TM, N]   bf16 adjacency panel (incl. self loops)
    dsrc_ref : [1, N]    D^-1/2 of sources
    ddst_ref : [TM, 1]   D^-1/2 of this block's destinations (no re-reduction)
    """
    ahat = adj_ref[...].astype(jnp.float32) * ddst_ref[...] * dsrc_ref[...]
    out_ref[...] = jnp.maximum(
        jnp.dot(ahat, hw_ref[...], preferred_element_type=jnp.float32) + bg_ref[...], 0.0)


def head_kernel(h_ref, pool_ref, wf1_ref, bf1_ref, wf2_ref, bf2_ref, out_ref):
    """global_mean_pool + fc1 + ReLU + (dropout = identity) + fc2."""
    pooled = jnp.dot(pool_ref[...], h_ref[...], preferred_element_type=jnp.float32)
    z = jnp.maximum(
        jnp.dot(pooled, wf1_ref[...], preferred_element_type=jnp.float32) + bf1_ref[...], 0.0)
    out_ref[...] = jnp.dot(z, wf2_ref[...], preferred_element_type=jnp.float32) + bf2_ref[...]


# ---------------------------------------------------------------------------
# Pallas-call wrappers
# ---------------------------------------------------------------------------
def _pre_gat(x, w, asrc, adst):
    N = x.shape[0]
    dh = w.shape[1] // HEADS
    return pl.pallas_call(
        partial(pre_gat_kernel, dh=dh),
        out_shape=(jax.ShapeDtypeStruct((HEADS, N, dh), jnp.float32),   # XW per-head
                   jax.ShapeDtypeStruct((HEADS, N), jnp.float32),       # a_src^T
                   jax.ShapeDtypeStruct((N, HEADS), jnp.float32)),      # a_dst
        in_specs=[_VM] * 4,
        out_specs=(_VM, _VM, _VM),
        compiler_params=pltpu.CompilerParams(vmem_limit_bytes=VMEM_LIMIT_BYTES),
    )(x, w, asrc, adst)


def _gat_layer(xw, asrcT, adst, adj, *, tm):
    N = adj.shape[0]
    dh = xw.shape[2]
    return pl.pallas_call(
        gat_kernel,
        out_shape=jax.ShapeDtypeStruct((N, HEADS * dh), jnp.float32),
        grid=(N // tm,),
        in_specs=[
            pl.BlockSpec((HEADS, N, dh), lambda i: (0, 0, 0)),   # XW per-head (resident)
            pl.BlockSpec((HEADS, N), lambda i: (0, 0)),          # a_src^T (resident)
            pl.BlockSpec((tm, HEADS), lambda i: (i, 0)),         # a_dst rows (blocked)
            pl.BlockSpec((tm, N), lambda i: (i, 0)),             # adj panel (streamed, bf16)
        ],
        out_specs=pl.BlockSpec((tm, HEADS * dh), lambda i: (i, 0)),
        compiler_params=pltpu.CompilerParams(
            dimension_semantics=("parallel",),
            vmem_limit_bytes=VMEM_LIMIT_BYTES),
    )(xw, asrcT, adst, adj)


def _bn_gat(y, meanm, b, g, be, w, asrc, adst):
    N = y.shape[0]
    dh = w.shape[1] // HEADS
    return pl.pallas_call(
        partial(bn_gat_kernel, dh=dh),
        out_shape=(jax.ShapeDtypeStruct((HEADS, N, dh), jnp.float32),
                   jax.ShapeDtypeStruct((HEADS, N), jnp.float32),
                   jax.ShapeDtypeStruct((N, HEADS), jnp.float32)),
        in_specs=[_VM] * 8,
        out_specs=(_VM, _VM, _VM),
        compiler_params=pltpu.CompilerParams(vmem_limit_bytes=VMEM_LIMIT_BYTES),
    )(y, meanm, b, g, be, w, asrc, adst)


def _bn_gcn(y, meanm, b, g, be, wg):
    N = y.shape[0]
    dh = wg.shape[1]
    return pl.pallas_call(
        bn_gcn_kernel,
        out_shape=jax.ShapeDtypeStruct((N, dh), jnp.float32),
        in_specs=[_VM] * 6,
        out_specs=_VM,
        compiler_params=pltpu.CompilerParams(vmem_limit_bytes=VMEM_LIMIT_BYTES),
    )(y, meanm, b, g, be, wg)


def _gcn_relu(hw, adj, dinv_row, dinv_col, bg, *, tm):
    N, dh = hw.shape
    return pl.pallas_call(
        gcn_kernel,
        out_shape=jax.ShapeDtypeStruct((N, dh), jnp.float32),
        grid=(N // tm,),
        in_specs=[
            pl.BlockSpec((N, dh), lambda i: (0, 0)),             # HW (resident)
            pl.BlockSpec((tm, N), lambda i: (i, 0)),             # adj panel (bf16)
            pl.BlockSpec((1, N), lambda i: (0, 0)),              # D^-1/2 of sources
            pl.BlockSpec((tm, 1), lambda i: (i, 0)),             # D^-1/2 of destinations
            pl.BlockSpec((1, dh), lambda i: (0, 0)),             # bg
        ],
        out_specs=pl.BlockSpec((tm, dh), lambda i: (i, 0)),
        compiler_params=pltpu.CompilerParams(
            dimension_semantics=("parallel",),
            vmem_limit_bytes=VMEM_LIMIT_BYTES),
    )(hw, adj, dinv_row, dinv_col, bg)


def _mlp_head(h, pool, wf1, bf1, wf2, bf2):
    G = pool.shape[0]
    dout = wf2.shape[1]
    # TODO(synk): out last-dim (=4) is lane-sparse; fine at this scale, pad to 128
    # lanes or move the FC head to plain XLA if G / output_dim grow.
    return pl.pallas_call(
        head_kernel,
        out_shape=jax.ShapeDtypeStruct((G, dout), jnp.float32),
        in_specs=[_VM] * 6,
        out_specs=_VM,
        compiler_params=pltpu.CompilerParams(vmem_limit_bytes=VMEM_LIMIT_BYTES),
    )(h, pool, wf1, bf1, wf2, bf2)


# ---------------------------------------------------------------------------
# Forward pass
# ---------------------------------------------------------------------------
def _attn_block_matrix(a):
    """Per-head attention vectors [HEADS, dh] -> block-diagonal [HEADS*dh, HEADS]."""
    n_heads, dh = a.shape
    m = jnp.zeros((n_heads * dh, n_heads), jnp.float32)
    for hd in range(n_heads):
        m = m.at[hd * dh:(hd + 1) * dh, hd].set(a[hd])
    return m


def gnn_forward(x, adj, pool, params, *, tm):
    N = x.shape[0]
    dh = params["wg"].shape[0]
    # TODO(synk): use pl.cdiv + row masking (or padding) for N not a multiple of tm.
    assert N % tm == 0

    # wrapper-side glue: O(N) degree vector (f32, before bf16 cast)
    deg = jnp.sum(adj, axis=1)                                   # in-degree incl. self-loops (> 0)
    dinv = jax.lax.rsqrt(deg)
    dinv_row = dinv.reshape(1, N).astype(jnp.float32)            # sources
    dinv_col = dinv.reshape(N, 1).astype(jnp.float32)            # destinations (blocked)
    # 0/1 exactly representable in bf16; int8 on v5e would halve HBM traffic further.
    adj_b = adj.astype(jnp.bfloat16)

    a1s = _attn_block_matrix(params["a1s"]); a1d = _attn_block_matrix(params["a1d"])
    a2s = _attn_block_matrix(params["a2s"]); a2d = _attn_block_matrix(params["a2d"])
    # head-mean matrix is now TM-independent and tiny: [HEADS*dh, dh], 1/HEADS folded in
    meanm = jnp.tile(jnp.eye(dh, dtype=jnp.float32), (HEADS, 1)) / HEADS

    # conv1 (GAT): hoisted pre-pass -> row-blocked attention
    xw1, a1srcT, a1dst = _pre_gat(x, params["w1"], a1s, a1d)
    y1 = _gat_layer(xw1, a1srcT, a1dst, adj_b, tm=tm)
    # head-mean + bias + bn1 + relu + (dropout=identity), fused with conv2 pre-pass
    xw2, a2srcT, a2dst = _bn_gat(y1, meanm, params["b1"], params["g1"], params["be1"],
                                 params["w2"], a2s, a2d)
    # conv2 (GAT)
    y2 = _gat_layer(xw2, a2srcT, a2dst, adj_b, tm=tm)
    # head-mean + bias + bn2 + relu + (dropout=identity), fused with HW = h @ Wg
    hw = _bn_gcn(y2, meanm, params["b2"], params["g2"], params["be2"], params["wg"])
    # conv3 (GCN) + relu
    h3 = _gcn_relu(hw, adj_b, dinv_row, dinv_col, params["bg"], tm=tm)
    # global_mean_pool -> fc1 -> relu -> (dropout) -> fc2
    return _mlp_head(h3, pool, params["wf1"], params["bf1"], params["wf2"], params["bf2"])


def _build_graph(num_nodes, nodes_per_graph):
    """Deterministic bidirectional ring inside each graph; returns edge_index [2, E]."""
    srcs, dsts = [], []
    for base in range(0, num_nodes, nodes_per_graph):
        for i in range(nodes_per_graph):
            a = base + i
            b = base + (i + 1) % nodes_per_graph
            srcs += [a, b]
            dsts += [b, a]
    return jnp.array([srcs, dsts], dtype=jnp.int32)


if __name__ == "__main__":
    N, DIN, HID, DOUT = 32, 8, 32, 4
    NODES_PER_GRAPH = 8
    G = N // NODES_PER_GRAPH
    # Destination-row block: multiple of 16 (bf16 adj sublane tile).  At this toy
    # size TM = N (grid of 1); sweep 128..512 at production N per the VMEM budget.
    TM = 32

    key = jax.random.PRNGKey(0)
    ks = jax.random.split(key, 16)

    # inputs
    x = jax.random.normal(ks[0], (N, DIN), jnp.float32)
    edge_index = _build_graph(N, NODES_PER_GRAPH)                    # [2, E]
    batch = jnp.repeat(jnp.arange(G, dtype=jnp.int32), NODES_PER_GRAPH)

    # glue: densify graph structure (adj[dst, src] = 1) + self loops, pooling matrix
    adj = jnp.zeros((N, N), jnp.float32).at[edge_index[1], edge_index[0]].set(1.0)
    adj = jnp.maximum(adj, jnp.eye(N, dtype=jnp.float32))            # add self loops
    onehot = (batch[None, :] == jnp.arange(G)[:, None]).astype(jnp.float32)   # [G, N]
    pool = onehot / jnp.sum(onehot, axis=1, keepdims=True)

    # deterministic parameter init
    s = 0.1
    params = dict(
        w1=s * jax.random.normal(ks[1], (DIN, HEADS * HID), jnp.float32),
        a1s=s * jax.random.normal(ks[2], (HEADS, HID), jnp.float32),
        a1d=s * jax.random.normal(ks[3], (HEADS, HID), jnp.float32),
        b1=s * jax.random.normal(ks[4], (1, HID), jnp.float32),
        g1=jnp.ones((1, HID), jnp.float32),
        be1=jnp.zeros((1, HID), jnp.float32),
        w2=s * jax.random.normal(ks[5], (HID, HEADS * HID), jnp.float32),
        a2s=s * jax.random.normal(ks[6], (HEADS, HID), jnp.float32),
        a2d=s * jax.random.normal(ks[7], (HEADS, HID), jnp.float32),
        b2=s * jax.random.normal(ks[8], (1, HID), jnp.float32),
        g2=jnp.ones((1, HID), jnp.float32),
        be2=jnp.zeros((1, HID), jnp.float32),
        wg=s * jax.random.normal(ks[9], (HID, HID), jnp.float32),
        bg=s * jax.random.normal(ks[10], (1, HID), jnp.float32),
        wf1=s * jax.random.normal(ks[11], (HID, HID), jnp.float32),
        bf1=s * jax.random.normal(ks[12], (1, HID), jnp.float32),
        wf2=s * jax.random.normal(ks[13], (HID, DOUT), jnp.float32),
        bf2=s * jax.random.normal(ks[14], (1, DOUT), jnp.float32),
    )

    out = gnn_forward(x, adj, pool, params, tm=TM)
    jax.block_until_ready(out)
    assert out.shape == (G, DOUT) and out.dtype == jnp.float32
    print("KERNEL_OK")
</pallas_src>

<mosaic_0001>
module attributes {stable_mosaic.version = 11 : i64} {
  func.func @pre_gat_kernel(%arg0: memref<32x8xf32, #tpu.memory_space<vmem>>, %arg1: memref<8x128xf32, #tpu.memory_space<vmem>>, %arg2: memref<128x4xf32, #tpu.memory_space<vmem>>, %arg3: memref<128x4xf32, #tpu.memory_space<vmem>>, %arg4: memref<4x32x32xf32, #tpu.memory_space<vmem>>, %arg5: memref<4x32xf32, #tpu.memory_space<vmem>>, %arg6: memref<32x4xf32, #tpu.memory_space<vmem>>) attributes {dimension_semantics = [], scalar_prefetch = 0 : i64, scratch_operands = 0 : i64, tpu.core_type = #tpu.core_type<tc>} {
    %c0 = arith.constant 0 : index
    %c0_0 = arith.constant 0 : index
    %0 = vector.load %arg0[%c0, %c0_0] : memref<32x8xf32, #tpu.memory_space<vmem>>, vector<32x8xf32>
    %c0_1 = arith.constant 0 : index
    %c0_2 = arith.constant 0 : index
    %1 = vector.load %arg1[%c0_1, %c0_2] : memref<8x128xf32, #tpu.memory_space<vmem>>, vector<8x128xf32>
    %cst = arith.constant dense<0.000000e+00> : vector<32x128xf32>
    %2 = tpu.matmul %0, %1, %cst {dimension_numbers = #tpu.dot_dimension_numbers<[1], [0], [0], [1], [0, 0, 1, 1], [], []>} : vector<32x8xf32>, vector<8x128xf32>, vector<32x128xf32> -> vector<32x128xf32>
    %c0_3 = arith.constant 0 : index
    %c0_4 = arith.constant 0 : index
    %3 = vector.load %arg2[%c0_3, %c0_4] : memref<128x4xf32, #tpu.memory_space<vmem>>, vector<128x4xf32>
    %cst_5 = arith.constant dense<0.000000e+00> : vector<32x4xf32>
    %4 = tpu.matmul %2, %3, %cst_5 {dimension_numbers = #tpu.dot_dimension_numbers<[1], [0], [0], [1], [0, 0, 1, 1], [], []>} : vector<32x128xf32>, vector<128x4xf32>, vector<32x4xf32> -> vector<32x4xf32>
    %c0_6 = arith.constant 0 : index
    %c0_7 = arith.constant 0 : index
    %5 = vector.load %arg3[%c0_6, %c0_7] : memref<128x4xf32, #tpu.memory_space<vmem>>, vector<128x4xf32>
    %cst_8 = arith.constant dense<0.000000e+00> : vector<32x4xf32>
    %6 = tpu.matmul %2, %5, %cst_8 {dimension_numbers = #tpu.dot_dimension_numbers<[1], [0], [0], [1], [0, 0, 1, 1], [], []>} : vector<32x128xf32>, vector<128x4xf32>, vector<32x4xf32> -> vector<32x4xf32>
    %c0_9 = arith.constant 0 : index
    %c0_10 = arith.constant 0 : index
    %7 = vector.load %arg6[%c0_9, %c0_10] : memref<32x4xf32, #tpu.memory_space<vmem>>, vector<32x4xf32>
    tpu.vector_store %arg6[%c0_9, %c0_10], %6 {strides = array<i32>} : memref<32x4xf32, #tpu.memory_space<vmem>>, vector<32x4xf32>,
    %8 = vector.extract_strided_slice %4 {offsets = [0, 0], sizes = [32, 1], strides = [1, 1]} : vector<32x4xf32> to vector<32x1xf32>
    %9 = tpu.transpose %8, [1, 0] : vector<32x1xf32> -> vector<1x32xf32>
    %c0_11 = arith.constant 0 : index
    %c0_12 = arith.constant 0 : index
    %10 = vector.load %arg5[%c0_11, %c0_12] : memref<4x32xf32, #tpu.memory_space<vmem>>, vector<1x32xf32>
    tpu.vector_store %arg5[%c0_11, %c0_12], %9 {strides = array<i32>} : memref<4x32xf32, #tpu.memory_space<vmem>>, vector<1x32xf32>,
    %11 = vector.extract_strided_slice %2 {offsets = [0, 0], sizes = [32, 32], strides = [1, 1]} : vector<32x128xf32> to vector<32x32xf32>
    %c0_13 = arith.constant 0 : index
    %c0_14 = arith.constant 0 : index
    %c0_15 = arith.constant 0 : index
    %12 = vector.load %arg4[%c0_13, %c0_14, %c0_15] : memref<4x32x32xf32, #tpu.memory_space<vmem>>, vector<1x32x32xf32>
    %13 = vector.shape_cast %12 : vector<1x32x32xf32> to vector<32x32xf32>
    %14 = vector.shape_cast %11 : vector<32x32xf32> to vector<1x32x32xf32>
    tpu.vector_store %arg4[%c0_13, %c0_14, %c0_15], %14 {strides = array<i32>} : memref<4x32x32xf32, #tpu.memory_space<vmem>>, vector<1x32x32xf32>,
    %15 = vector.extract_strided_slice %4 {offsets = [0, 1], sizes = [32, 1], strides = [1, 1]} : vector<32x4xf32> to vector<32x1xf32>
    %16 = tpu.transpose %15, [1, 0] : vector<32x1xf32> -> vector<1x32xf32>
    %c1 = arith.constant 1 : index
    %c0_16 = arith.constant 0 : index
    %17 = vector.load %arg5[%c1, %c0_16] : memref<4x32xf32, #tpu.memory_space<vmem>>, vector<1x32xf32>
    tpu.vector_store %arg5[%c1, %c0_16], %16 {strides = array<i32>} : memref<4x32xf32, #tpu.memory_space<vmem>>, vector<1x32xf32>,
    %18 = vector.extract_strided_slice %2 {offsets = [0, 32], sizes = [32, 32], strides = [1, 1]} : vector<32x128xf32> to vector<32x32xf32>
    %c1_17 = arith.constant 1 : index
    %c0_18 = arith.constant 0 : index
    %c0_19 = arith.constant 0 : index
    %19 = vector.load %arg4[%c1_17, %c0_18, %c0_19] : memref<4x32x32xf32, #tpu.memory_space<vmem>>, vector<1x32x32xf32>
    %20 = vector.shape_cast %19 : vector<1x32x32xf32> to vector<32x32xf32>
    %21 = vector.shape_cast %18 : vector<32x32xf32> to vector<1x32x32xf32>
    tpu.vector_store %arg4[%c1_17, %c0_18, %c0_19], %21 {strides = array<i32>} : memref<4x32x32xf32, #tpu.memory_space<vmem>>, vector<1x32x32xf32>,
    %22 = vector.extract_strided_slice %4 {offsets = [0, 2], sizes = [32, 1], strides = [1, 1]} : vector<32x4xf32> to vector<32x1xf32>
    %23 = tpu.transpose %22, [1, 0] : vector<32x1xf32> -> vector<1x32xf32>
    %c2 = arith.constant 2 : index
    %c0_20 = arith.constant 0 : index
    %24 = vector.load %arg5[%c2, %c0_20] : memref<4x32xf32, #tpu.memory_space<vmem>>, vector<1x32xf32>
    tpu.vector_store %arg5[%c2, %c0_20], %23 {strides = array<i32>} : memref<4x32xf32, #tpu.memory_space<vmem>>, vector<1x32xf32>,
    %25 = vector.extract_strided_slice %2 {offsets = [0, 64], sizes = [32, 32], strides = [1, 1]} : vector<32x128xf32> to vector<32x32xf32>
    %c2_21 = arith.constant 2 : index
    %c0_22 = arith.constant 0 : index
    %c0_23 = arith.constant 0 : index
    %26 = vector.load %arg4[%c2_21, %c0_22, %c0_23] : memref<4x32x32xf32, #tpu.memory_space<vmem>>, vector<1x32x32xf32>
    %27 = vector.shape_cast %26 : vector<1x32x32xf32> to vector<32x32xf32>
    %28 = vector.shape_cast %25 : vector<32x32xf32> to vector<1x32x32xf32>
    tpu.vector_store %arg4[%c2_21, %c0_22, %c0_23], %28 {strides = array<i32>} : memref<4x32x32xf32, #tpu.memory_space<vmem>>, vector<1x32x32xf32>,
    %29 = vector.extract_strided_slice %4 {offsets = [0, 3], sizes = [32, 1], strides = [1, 1]} : vector<32x4xf32> to vector<32x1xf32>
    %30 = tpu.transpose %29, [1, 0] : vector<32x1xf32> -> vector<1x32xf32>
    %c3 = arith.constant 3 : index
    %c0_24 = arith.constant 0 : index
    %31 = vector.load %arg5[%c3, %c0_24] : memref<4x32xf32, #tpu.memory_space<vmem>>, vector<1x32xf32>
    tpu.vector_store %arg5[%c3, %c0_24], %30 {strides = array<i32>} : memref<4x32xf32, #tpu.memory_space<vmem>>, vector<1x32xf32>,
    %32 = vector.extract_strided_slice %2 {offsets = [0, 96], sizes = [32, 32], strides = [1, 1]} : vector<32x128xf32> to vector<32x32xf32>
    %c3_25 = arith.constant 3 : index
    %c0_26 = arith.constant 0 : index
    %c0_27 = arith.constant 0 : index
    %33 = vector.load %arg4[%c3_25, %c0_26, %c0_27] : memref<4x32x32xf32, #tpu.memory_space<vmem>>, vector<1x32x32xf32>
    %34 = vector.shape_cast %33 : vector<1x32x32xf32> to vector<32x32xf32>
    %35 = vector.shape_cast %32 : vector<32x32xf32> to vector<1x32x32xf32>
    tpu.vector_store %arg4[%c3_25, %c0_26, %c0_27], %35 {strides = array<i32>} : memref<4x32x32xf32, #tpu.memory_space<vmem>>, vector<1x32x32xf32>,
    return
  }
}

</mosaic_0001>

<bundles_post_ra>
// kernel: tpu_custom_call.1
= control target key start
LH: loop header
LB: loop body
LE: loop exit
PB: predicated region body
PF: predicated region fallthrough
CT: control target
= control target key end

     0   :  { %12 = vsyncpa [#allocation3], 0  ;;  %vm27_vm0 = vcmask 64512   ;;  %s1091_s0 = inlined_call_operand.vmem [shape: f32[32,8], index: 0, kind: input, shape index: {}]   ;;  %s1092_s1 = inlined_call_operand.vmem [shape: f32[8,128], index: 1, kind: input, shape index: {}]   ;;  %s1093_s2 = inlined_call_operand.vmem [shape: f32[128,4], index: 2, kind: input, shape index: {}]   ;;  %s1094_s3 = inlined_call_operand.vmem [shape: f32[128,4], index: 3, kind: input, shape index: {}]   ;;  %s1095_s4 = inlined_call_operand.hbm [shape: f32[4,32,32], index: 4, kind: output, shape index: {0}]   ;;  %s1096_s5 = inlined_call_operand.hbm [shape: f32[4,32], index: 5, kind: output, shape index: {1}]   ;;  %s1097_s6 = inlined_call_operand.vmem [shape: f32[32,4], index: 6, kind: output, shape index: {2}]  }
   0x1   :  { %v26_v0 = vld [vmem:[%s1092_s1] sm:$0xff]  ;;  %v23_v2 = vld [vmem:[%s1091_s0 + $0x8] sm:$0xff]  ;;  %v24_v3 = vld [vmem:[%s1091_s0 + $0x10] sm:$0xff] }
   0x2   :  { %v22_v1 = vld [vmem:[%s1091_s0] sm:$0xff]  ;;  %648 = vmatprep.subr.mxu0 %v26_v0  ;;  %v25_v5 = vld [vmem:[%s1091_s0 + $0x18] sm:$0xff]  ;;  %v126_v6 = vld [vmem:[%s1093_s2 + $0x8] sm:$0xff] }
   0x3   :  { %650 = vmatprep.mubr.msk.f32.mxu0 %vm27_vm0, %v22_v1  ;;  %v125_v4 = vld [vmem:[%s1093_s2] sm:$0xff]  ;;  %649 = vmatpush3.msra.mxu0 %v26_v0  ;;  %v227_v8 = vld [vmem:[%s1094_s3 + $0x8] sm:$0xff]  ;;  %v127_v11 = vld [vmem:[%s1093_s2 + $0x10] sm:$0xff] }
   0x4   :  { %v226_v7 = vld [vmem:[%s1094_s3] sm:$0xff]  ;;  %651 = vmatmul.mubr.msk.f32.vlgmr.msra.gmra.mrb[0].mxu0 %vm27_vm0, %v23_v2  ;;  %v732_v9 = vpack.c.bf16 %v126_v6, %v125_v4  ;;  %v128_v12 = vld [vmem:[%s1093_s2 + $0x18] sm:$0xff]  ;;  %v228_v13 = vld [vmem:[%s1094_s3 + $0x10] sm:$0xff] }
   0x5   :  { %v764_v10 = vpack.c.bf16 %v227_v8, %v226_v7  ;;  %653 = vmatprep.mubr.msk.f32.mxu0 %vm27_vm0, %v24_v3  ;;  %v736_v14 = vpack.c.bf16 %v128_v12, %v127_v11  ;;  %v229_v15 = vld [vmem:[%s1094_s3 + $0x18] sm:$0xff]  ;;  %v129_v16 = vld [vmem:[%s1093_s2 + $0x20] sm:$0xff]  ;;  %v130_v17 = vld [vmem:[%s1093_s2 + $0x28] sm:$0xff] }
   0x6   :  { %733 = vmatprep.subr.bf16.mxu1 %v732_v9  ;;  %v768_v18 = vpack.c.bf16 %v229_v15, %v228_v13  ;;  %v230_v19 = vld [vmem:[%s1094_s3 + $0x20] sm:$0xff]  ;;  %v231_v20 = vld [vmem:[%s1094_s3 + $0x28] sm:$0xff]  ;;  %v740_v21 = vpack.c.bf16 %v130_v17, %v129_v16  ;;  %v131_v23 = vld [vmem:[%s1093_s2 + $0x30] sm:$0xff] }
   0x7   :  { %765 = vmatprep.subr.bf16.mxu0 %v764_v10  ;;  %735 = vmatpush3.bf16.msra.mxu1 %v732_v9  ;;  %v772_v22 = vpack.c.bf16 %v231_v20, %v230_v19  ;;  %v132_v24 = vld [vmem:[%s1093_s2 + $0x38] sm:$0xff]  ;;  %v232_v25 = vld [vmem:[%s1094_s3 + $0x30] sm:$0xff]  ;;  %v133_v29 = vld [vmem:[%s1093_s2 + $0x40] sm:$0xff] }
   0x8   :  { %767 = vmatpush3.bf16.msra.mxu0 %v764_v10  ;;  %737 = vmatprep.subr.bf16.mxu1 %v736_v14  ;;  %v233_v26 = vld [vmem:[%s1094_s3 + $0x38] sm:$0xff]  ;;  %v744_v27 = vpack.c.bf16 %v132_v24, %v131_v23  ;;  %v134_v30 = vld [vmem:[%s1093_s2 + $0x48] sm:$0xff]  ;;  %v234_v31 = vld [vmem:[%s1094_s3 + $0x40] sm:$0xff] }
   0x9   :  { %654 = vmatmul.mubr.msk.f32.gmra.mrb[2].mxu0 %vm27_vm0, %v25_v5  ;;  %769 = vmatprep.subr.bf16.mxu0 %v768_v18  ;;  %v776_v28 = vpack.c.bf16 %v233_v26, %v232_v25  ;;  %v235_v32 = vld [vmem:[%s1094_s3 + $0x48] sm:$0xff] }
   0xb   :  { %739 = vmatpush3.bf16.msra.mxu1 %v736_v14 }
   0xc   :  { %771 = vmatpush3.bf16.msra.mxu0 %v768_v18  ;;  %741 = vmatprep.subr.bf16.mxu1 %v740_v21 }
   0xd   :  { %773 = vmatprep.subr.bf16.mxu0 %v772_v22 }
   0xe   :  { %13 = vsyncpa [#allocation5], 0  ;;  %v748_v33 = vpack.c.bf16 %v134_v30, %v133_v29  ;;  %v780_v34 = vpack.c.bf16 %v235_v32, %v234_v31  ;;  %v135_v35 = vld [vmem:[%s1093_s2 + $0x50] sm:$0xff]  ;;  %v136_v36 = vld [vmem:[%s1093_s2 + $0x58] sm:$0xff]  ;;  %vm366_vm1 = vcmask 261120   ;;  %vm327_vm2 = vcmask 31744  }
   0xf   :  { %743 = vmatpush3.bf16.msra.mxu1 %v740_v21  ;;  %v236_v37 = vld [vmem:[%s1094_s3 + $0x50] sm:$0xff]  ;;  %v237_v38 = vld [vmem:[%s1094_s3 + $0x58] sm:$0xff]  ;;  %v752_v39 = vpack.c.bf16 %v136_v36, %v135_v35  ;;  %v137_v41 = vld [vmem:[%s1093_s2 + $0x60] sm:$0xff]  ;;  %s857_s19 = smov 125   ;;  %s858_s20 = smov 127   ;;  %vm364_vm3 = vcmask 253952  }
  0x10   :  { %775 = vmatpush3.bf16.msra.mxu0 %v772_v22  ;;  %745 = vmatprep.subr.bf16.mxu1 %v744_v27  ;;  %v784_v40 = vpack.c.bf16 %v237_v38, %v236_v37  ;;  %v138_v42 = vld [vmem:[%s1093_s2 + $0x68] sm:$0xff]  ;;  %v238_v43 = vld [vmem:[%s1094_s3 + $0x60] sm:$0xff]  ;;  %v139_v47 = vld [vmem:[%s1093_s2 + $0x70] sm:$0xff]  ;;  %s859_s23 = smov 126   ;;  %s860_s28 = smov 32  }
  0x11   :  { %777 = vmatprep.subr.bf16.mxu0 %v776_v28  ;;  %v239_v44 = vld [vmem:[%s1094_s3 + $0x68] sm:$0xff]  ;;  %v756_v45 = vpack.c.bf16 %v138_v42, %v137_v41  ;;  %v140_v48 = vld [vmem:[%s1093_s2 + $0x78] sm:$0xff]  ;;  %v240_v49 = vld [vmem:[%s1094_s3 + $0x70] sm:$0xff]  ;;  %s855_s2 = smov 64  }
  0x12   :  { %v788_v46 = vpack.c.bf16 %v239_v44, %v238_v43  ;;  %v241_v50 = vld [vmem:[%s1094_s3 + $0x78] sm:$0xff]  ;;  %v760_v51 = vpack.c.bf16 %v140_v48, %v139_v47  ;;  %s856_s3 = smov 96  }
  0x13   :  { %747 = vmatpush3.bf16.msra.mxu1 %v744_v27  ;;  %v792_v52 = vpack.c.bf16 %v241_v50, %v240_v49 }
  0x14   :  { %779 = vmatpush3.bf16.msra.mxu0 %v776_v28  ;;  %749 = vmatprep.subr.bf16.mxu1 %v748_v33 }
  0x15   :  { %781 = vmatprep.subr.bf16.mxu0 %v780_v34 }
  0x17   :  { %751 = vmatpush3.bf16.msra.mxu1 %v748_v33 }
  0x18   :  { %783 = vmatpush3.bf16.msra.mxu0 %v780_v34  ;;  %753 = vmatprep.subr.bf16.mxu1 %v752_v39 }
  0x19   :  { %785 = vmatprep.subr.bf16.mxu0 %v784_v40 }
  0x1b   :  { %755 = vmatpush3.bf16.msra.mxu1 %v752_v39 }
  0x1c   :  { %787 = vmatpush3.bf16.msra.mxu0 %v784_v40  ;;  %757 = vmatprep.subr.bf16.mxu1 %v756_v45 }
  0x1d   :  { %789 = vmatprep.subr.bf16.mxu0 %v788_v46 }
  0x1f   :  { %759 = vmatpush3.bf16.msra.mxu1 %v756_v45 }
  0x20   :  { %791 = vmatpush3.bf16.msra.mxu0 %v788_v46  ;;  %761 = vmatprep.subr.bf16.mxu1 %v760_v51 }
  0x21   :  { %793 = vmatprep.subr.bf16.mxu0 %v792_v52 }
  0x23   :  { %763 = vmatpush3.bf16.msra.mxu1 %v760_v51 }
  0x24   :  { %795 = vmatpush3.bf16.msra.mxu0 %v792_v52 }
  0xd7   :  { %v1015_v53 = vpop.f32.mrb[0].mxu0 }
  0xd8   :  { %368 = vst.msk [vmem:[#allocation2 + $0x8] sm:$0xff] %vm366_vm1, %v1015_v53  ;;  %488 = vrot.lane.b32.xlu0 %v1015_v53, %s855_s2  ;;  %426 = vrot.lane.b32.xlu1 %v1015_v53, %s856_s3  ;;  %v106_v54 = vpop.f32.mrb[1].mxu0 }
  0xd9   :  { %367 = vst.msk [vmem:[#allocation2] sm:$0xff] %vm366_vm1, %v106_v54  ;;  %688 = vmatprep.mubr.f32.mxu1 %v106_v54  ;;  %726 = vmatprep.mubr.f32.mxu0 %v106_v54 }
  0xda   :  { %689 = vmatmul.mubr.f32.vlgmr.msra.gmra.mrb[0].mxu1 %v1015_v53  ;;  %727 = vmatmul.mubr.f32.vlgmr.msra.gmra.mrb[4].mxu0 %v1015_v53 }
  0xdc   :  { %v1025_v55 = vpop.f32.mrb[2].mxu0  ;;  %486 = vrot.lane.b32.xlu0 %v106_v54, %s855_s2  ;;  %424 = vrot.lane.b32.xlu1 %v106_v54, %s856_s3 }
  0xdd   :  { %370 = vst.msk [vmem:[#allocation2 + $0x18] sm:$0xff] %vm366_vm1, %v1025_v55  ;;  %v116_v56 = vpop.f32.mrb[3].mxu0 }
  0xde   :  { %369 = vst.msk [vmem:[#allocation2 + $0x10] sm:$0xff] %vm366_vm1, %v116_v56  ;;  %691 = vmatprep.mubr.f32.mxu1 %v116_v56  ;;  %729 = vmatprep.mubr.f32.mxu0 %v116_v56 }
  0xdf   :  { %692 = vmatmul.mubr.f32.gmra.mrb[2].mxu1 %v1025_v55  ;;  %730 = vmatmul.mubr.f32.gmra.mrb[6].mxu0 %v1025_v55 }
  0xe0   :  { %430 = vrot.lane.b32.xlu1 %v1025_v55, %s856_s3  ;;  %490 = vrot.lane.b32.xlu0 %v116_v56, %s855_s2 }
  0xe4   :  { %428 = vrot.lane.b32.xlu1 %v116_v56, %s856_s3 }
 0x14a   :  { %v489_v57 = vpop.permute.xlu0 %488  ;;  %v427_v58 = vpop.permute.xlu1 %426 }
 0x14b   :  { %500 = vst.msk [vmem:[#allocation2 + $0x48] sm:$0xff] %vm366_vm1, %v489_v57  ;;  %438 = vst.msk [vmem:[#allocation2 + $0x28] sm:$0xff] %vm366_vm1, %v427_v58 }
 0x14e   :  { %v487_v59 = vpop.permute.xlu0 %486  ;;  %v425_v60 = vpop.permute.xlu1 %424 }
 0x14f   :  { %499 = vst.msk [vmem:[#allocation2 + $0x40] sm:$0xff] %vm366_vm1, %v487_v59  ;;  %437 = vst.msk [vmem:[#allocation2 + $0x20] sm:$0xff] %vm366_vm1, %v425_v60 }
 0x152   :  { %v431_v61 = vpop.permute.xlu1 %430  ;;  %v491_v62 = vpop.permute.xlu0 %490 }
 0x153   :  { %440 = vst.msk [vmem:[#allocation2 + $0x38] sm:$0xff] %vm366_vm1, %v431_v61  ;;  %501 = vst.msk [vmem:[#allocation2 + $0x50] sm:$0xff] %vm366_vm1, %v491_v62 }
 0x156   :  { %v429_v63 = vpop.permute.xlu1 %428 }
 0x157   :  { %439 = vst.msk [vmem:[#allocation2 + $0x30] sm:$0xff] %vm366_vm1, %v429_v63 }
 0x1ad   :  { %v690_v0 = vpop.f32.mrb[0].mxu1  ;;  %v728_v1 = vpop.f32.mrb[4].mxu0 }
 0x1ae   :  { %329 = vst.msk [vmem:[%s1097_s6 + $0x8] sm:$0xff] %vm327_vm2, %v728_v1  ;;  %v207_v2 = vpop.f32.mrb[1].mxu1  ;;  %505 = vrot.lane.b32.xlu0 %v690_v0, %s857_s19  ;;  %377 = vrot.lane.b32.xlu1 %v690_v0, %s858_s20  ;;  %v308_v3 = vpop.f32.mrb[5].mxu0 }
 0x1af   :  { %328 = vst.msk [vmem:[%s1097_s6] sm:$0xff] %vm327_vm2, %v308_v3 }
 0x1b2   :  { %v693_v4 = vpop.f32.mrb[2].mxu1  ;;  %v731_v5 = vpop.f32.mrb[6].mxu0  ;;  %441 = vrot.lane.b32.xlu0 %v207_v2, %s859_s23  ;;  %443 = vrot.lane.b32.xlu1 %v690_v0, %s859_s23 }
 0x1b3   :  { %331 = vst.msk [vmem:[%s1097_s6 + $0x18] sm:$0xff] %vm327_vm2, %v731_v5  ;;  %v217_v6 = vpop.f32.mrb[3].mxu1  ;;  %v318_v7 = vpop.f32.mrb[7].mxu0 }
 0x1b4   :  { %330 = vst.msk [vmem:[%s1097_s6 + $0x10] sm:$0xff] %vm327_vm2, %v318_v7  ;;  %s861_s6 = smov [#allocation4]  }
 0x1b5   :  { %s583_s29 = sshll.u32 %s861_s6, 4  ;;  %s584_s29 = int_to_ptr.vmem [resolvable:$true] %s583_s29 }
 0x1b6   :  { %503 = vrot.lane.b32.xlu0 %v207_v2, %s857_s19  ;;  %375 = vrot.lane.b32.xlu1 %v207_v2, %s858_s20  ;;  %s807_s30 = scalar_lea.vmem %s584_s29, 64  ;;  %p812_p1 = scmp.lt.s32.totalorder %s584_s29, %s584_s29 }
 0x1b7   :  { %p808_p0 = scmp.ne.s32.totalorder %s584_s29, %s807_s30  ;;  %p813_p2 = scmp.lt.s32.totalorder %s807_s30, %s807_s30 }
 0x1b9   :  { %p814_p3 = por %p813_p2, %p812_p1 }
 0x1ba   :  { %509 = vrot.lane.b32.xlu0 %v693_v4, %s857_s19  ;;  %381 = vrot.lane.b32.xlu1 %v693_v4, %s858_s20 }
 0x1bb   :  { %p815_p4 = pnand %p814_p3, %p808_p0 }
 0x1be   :  { %447 = vrot.lane.b32.xlu1 %v693_v4, %s859_s23  ;;  %507 = vrot.lane.b32.xlu0 %v217_v6, %s857_s19 }
 0x1c2   :  { %548 = vrot.lane.b32.xlu0 %v106_v54, %s860_s28  ;;  %379 = vrot.lane.b32.xlu1 %v217_v6, %s858_s20 }
 0x1c6   :  { %550 = vrot.lane.b32.xlu0 %v1015_v53, %s860_s28  ;;  %445 = vrot.lane.b32.xlu1 %v217_v6, %s859_s23 }
 0x1ca   :  { %552 = vrot.lane.b32.xlu0 %v116_v56, %s860_s28 }
 0x1ce   :  { %554 = vrot.lane.b32.xlu0 %v1025_v55, %s860_s28 }
 0x1ec   :  { %332 = vxpose.xlu0.b32.start [1/4] (short) (narrow) %v207_v2, 8 }
 0x1f0   :  { %333 = vxpose.xlu0.b32.cont [2/4] (short) (narrow) %v690_v0, 8 }
 0x1f4   :  { %334 = vxpose.xlu0.b32.cont [3/4] (short) (narrow) %v217_v6, 8 }
 0x1f8   :  { %335 = vxpose.xlu0.b32.end [4/4] (short) (narrow) %v693_v4, 8 }
 0x220   :  { %v506_v8 = vpop.permute.xlu0 %505  ;;  %v378_v9 = vpop.permute.xlu1 %377 }
 0x224   :  { %v442_v10 = vpop.permute.xlu0 %441  ;;  %v444_v11 = vpop.permute.xlu1 %443 }
 0x225   :  { %453 = vxpose.xlu1.b32.start [1/4] (short) (narrow) %v442_v10, 8 }
 0x228   :  { %v504_v12 = vpop.permute.xlu0 %503  ;;  %v376_v13 = vpop.permute.xlu1 %375 }
 0x229   :  { %387 = vxpose.xlu0.b32.start [1/4] (short) (narrow) %v376_v13, 8  ;;  %454 = vxpose.xlu1.b32.cont [2/4] (short) (narrow) %v444_v11, 8 }
 0x22c   :  { %v510_v14 = vpop.permute.xlu0 %509  ;;  %v382_v15 = vpop.permute.xlu1 %381 }
 0x22d   :  { %388 = vxpose.xlu0.b32.cont [2/4] (short) (narrow) %v378_v9, 8 }
 0x230   :  { %v448_v16 = vpop.permute.xlu1 %447  ;;  %v508_v17 = vpop.permute.xlu0 %507 }
 0x234   :  { %v549_v18 = vpop.permute.xlu0 %548  ;;  %v380_v19 = vpop.permute.xlu1 %379 }
 0x235   :  { %561 = vst.msk [vmem:[#allocation2 + $0x60] sm:$0xff] %vm366_vm1, %v549_v18  ;;  %389 = vxpose.xlu0.b32.cont [3/4] (short) (narrow) %v380_v19, 8 }
 0x238   :  { %v551_v20 = vpop.permute.xlu0 %550  ;;  %v446_v21 = vpop.permute.xlu1 %445 }
 0x239   :  { %562 = vst.msk [vmem:[#allocation2 + $0x68] sm:$0xff] %vm366_vm1, %v551_v20  ;;  %390 = vxpose.xlu0.b32.end [4/4] (short) (narrow) %v382_v15, 8  ;;  %455 = vxpose.xlu1.b32.cont [3/4] (short) (narrow) %v446_v21, 8 }
 0x23c   :  { %v553_v22 = vpop.permute.xlu0 %552 }
 0x23d   :  { %563 = vst.msk [vmem:[#allocation2 + $0x70] sm:$0xff] %vm366_vm1, %v553_v22  ;;  %515 = vxpose.xlu0.b32.start [1/4] (short) (narrow) %v504_v12, 8  ;;  %456 = vxpose.xlu1.b32.end [4/4] (short) (narrow) %v448_v16, 8 }
 0x240   :  { %v555_v23 = vpop.permute.xlu0 %554 }
 0x241   :  { %564 = vst.msk [vmem:[#allocation2 + $0x78] sm:$0xff] %vm366_vm1, %v555_v23  ;;  %516 = vxpose.xlu0.b32.cont [2/4] (short) (narrow) %v506_v8, 8 }
 0x245   :  { %517 = vxpose.xlu0.b32.cont [3/4] (short) (narrow) %v508_v17, 8 }
 0x249   :  { %518 = vxpose.xlu0.b32.end [4/4] (short) (narrow) %v510_v14, 8 }
 0x25b   :  { %492 = vrot.lane.b32.xlu1 %v1025_v55, %s855_s2 }
 0x26c   :  { %v348_v24 = vpop.trf.xlu0 }
 0x26d   :  { %365 = vst.msk [vmem:[#allocation4] sm:$0x1] %vm364_vm3, %v348_v24 }
 0x2ad   :  { %v403_v25 = vpop.trf.xlu0 }
 0x2ae   :  { %419 = vst.msk [vmem:[#allocation4 + $0x1] sm:$0x1] %vm364_vm3, %v403_v25 }
 0x2b1   :  { %v469_v26 = vpop.trf.xlu1 }
 0x2b2   :  { %485 = vst.msk [vmem:[#allocation4 + $0x2] sm:$0x1] %vm364_vm3, %v469_v26 }
 0x2bd   :  { %v531_v27 = vpop.trf.xlu0 }
 0x2be   :  { %547 = vst.msk [vmem:[#allocation4 + $0x3] sm:$0x1] %vm364_vm3, %v531_v27 }
 0x2bf   :  { %818 = shalt.err (!%p815_p4)
}
 0x2c0   :  { %s819_s8 = scalar_lea.hbm %s1096_s5, 64 }
 0x2c1   :  { %p820_p5 = scmp.ne.s32.totalorder %s1096_s5, %s819_s8  ;;  %p823_p6 = scmp.lt.u32.totalorder %s819_s8, %s1096_s5 }
 0x2c3   :  { %p825_p7 = pnand %p823_p6, %p820_p5 }
 0x2c5   :  { %828 = shalt.err (!%p825_p7)
}
 0x2c6   :  { %586 = dma.vmem_to_hbm [thread:$0]  %s584_s29, 64, %s1096_s5, [#allocation5]  }
 0x2c7   :  { %s862_s15 = smov [#allocation2]  }
 0x2c8   :  { %s570_s0 = sshll.u32 %s862_s15, 4  ;;  %s571_s0 = int_to_ptr.vmem [resolvable:$true] %s570_s0 }
 0x2c9   :  { %s829_s16 = scalar_lea.vmem %s571_s0, 2048  ;;  %p834_p9 = scmp.lt.s32.totalorder %s571_s0, %s571_s0 }
 0x2ca   :  { %p830_p8 = scmp.ne.s32.totalorder %s571_s0, %s829_s16  ;;  %p835_p10 = scmp.lt.s32.totalorder %s829_s16, %s829_s16 }
 0x2cc   :  { %p836_p11 = por %p835_p10, %p834_p9 }
 0x2cd   :  { %v493_v28 = vpop.permute.xlu1 %492 }
 0x2ce   :  { %502 = vst.msk [vmem:[#allocation2 + $0x58] sm:$0xff] %vm366_vm1, %v493_v28  ;;  %p837_p12 = pnand %p836_p11, %p830_p8 }
 0x2d0   :  { %840 = shalt.err (!%p837_p12)
}
 0x2d1   :  { %s841_s17 = scalar_lea.hbm %s1095_s4, 2048 }
 0x2d2   :  { %p842_p13 = scmp.ne.s32.totalorder %s1095_s4, %s841_s17  ;;  %p845_p0 = scmp.lt.u32.totalorder %s841_s17, %s1095_s4 }
 0x2d4   :  { %p847_p1 = pnand %p845_p0, %p842_p13 }
 0x2d6   :  { %850 = shalt.err (!%p847_p1)
}
 0x2d7   :  { %s863_s21 = smov 128   ;;  %s864_s22 = smov 8  }
 0x2d8   :  { %576 = dma.vmem_to_hbm [thread:$0]  %s571_s0, 2048, %s1095_s4, [#allocation3], %s863_s21, %s863_s21, %s864_s22  }
 0x2d9   :  { %851 = dma.done.wait [#allocation3], 2048  }
 0x2da   :  { %852 = vsyncadd [#allocation3], 4294965248 }
 0x2db   :  { %853 = dma.done.wait [#allocation5], 64  }
 0x2dc   :  { %854 = vsyncadd [#allocation5], 4294967232 }
 0x2dd   :  { %597 = vsyncpa [#allocation3], 1 }
 0x2de   :  { %598 = vsyncpa [#allocation5], 1 }

</bundles_post_ra>
